<compile_context>
chip_gen: v7x
topology: tpu7x:2x2x1
jax: 0.10.0
libtpu: 0.0.40
codegen_flags: <defaults>
</compile_context>

<pallas_src>
import functools

import jax
import jax.numpy as jnp
from jax.experimental import pallas as pl
from jax.experimental.pallas import tpu as pltpu


def _shift_cols(a, d):
    """b[:, j] = a[:, j + d] if 0 <= j + d < n else 0  (static lane shift)."""
    if d == 0:
        return a
    n = a.shape[-1]
    pad = jnp.zeros(a.shape[:-1] + (abs(d),), a.dtype)
    if d > 0:
        return jnp.concatenate([a[:, d:], pad], axis=-1)
    return jnp.concatenate([pad, a[:, :n + d]], axis=-1)


def _token_extractor_kernel(x_ref, w_ref, b_ref, mask_ref, out_ref, *,
                            H, W, C, S, F):
    """One grid step == F frames.

    x_ref   : (F*C, HW)       frames, NCHW; row f*C + c is frame f, channel c
    w_ref   : (9*F*S, F*C)    block-diagonal conv weight,
                              row t*F*S + f*S + s, col f*C + c = w[s, c, kh, kw]
    b_ref   : (F*S, 1)        conv bias tiled per frame
    mask_ref: (2, HW)         lane masks: row 0 -> w < W-1, row 1 -> w >= 1
    out_ref : (1, S, F*C)     out[0, s, f*C + c] = max_hw x[f,c,hw]*sigmoid(conv)[f,s,hw]
    """
    HW = H * W
    FS = F * S

    X = x_ref[...]                                               # (F*C, HW)

    # All F frames, all 9 taps, all S tokens in a single MXU matmul.
    P = jnp.dot(w_ref[...], X, preferred_element_type=jnp.float32)  # (9*F*S, HW)

    def tap(kh, kw):
        # SAME 3x3 cross-correlation tap: shift each frame's (S, HW) rows by
        # (kh-1)*W + (kw-1).  Rows are independent frames, so the shift's
        # zero fill handles the top/bottom image boundary exactly.
        t = kh * 3 + kw
        return _shift_cols(P[t * FS:(t + 1) * FS, :], (kh - 1) * W + (kw - 1))

    m_right = mask_ref[0:1, :]     # valid where w < W-1  (taps sampling w+1)
    m_left = mask_ref[1:2, :]      # valid where w >= 1   (taps sampling w-1)

    # Group taps by kw so each horizontal edge mask is applied exactly once.
    left = tap(0, 0) + tap(1, 0) + tap(2, 0)
    mid = tap(0, 1) + tap(1, 1) + tap(2, 1)
    right = tap(0, 2) + tap(1, 2) + tap(2, 2)
    conv = left * m_left + mid + right * m_right                 # (F*S, HW)

    kmap = jax.nn.sigmoid(conv + b_ref[...])                     # (F*S, HW)

    # Per-token spatial attention + global max pool (AdaptiveMaxPool2d((1,1))).
    # Channel loop avoids a (S, C, HW) half-empty-vreg intermediate.
    cols = []
    for f in range(F):                 # F <= 16 -> bounded static unroll
        kf = kmap[f * S:(f + 1) * S, :]                          # (S, HW)
        for c in range(C):
            xr = X[f * C + c:f * C + c + 1, :]                   # (1, HW) bcast
            cols.append(jnp.max(kf * xr, axis=-1, keepdims=True))  # (S, 1)
    out_ref[0] = jnp.concatenate(cols, axis=1)                   # (S, F*C)


def _pick_frames_per_step(BT, C, cap=16):
    """Largest divisor F of BT with F <= cap and a dense (F*C, HW) block,
    preferring F that keeps the grid >= 2 steps."""
    # TODO(synk): for very large BT with no small divisor this falls back to
    # F == BT (single fully-resident step); pad BT instead for such shapes.
    best = None
    for F in range(min(BT, cap), 0, -1):
        if BT % F:
            continue
        if (F * C) % 8 == 0 or F == BT:
            if best is None:
                best = F
            if BT // F >= 2:
                return F
    return best if best is not None else BT


def token_extractor_forward(x, conv_w, conv_b, *, N_tokens, H_out=1, W_out=1,
                            reduction="stack", frames_per_step=None):
    """x: [B, T, C, H, W]; conv_w: (S, C, 3, 3) PyTorch OIHW; conv_b: (S,).

    Returns 'stack'  -> [B, T, S*C, H_out, W_out]
            'concat' -> [B, T*S, C, H_out, W_out]
    """
    # TODO(synk): general AdaptiveMaxPool2d output sizes; only (1, 1) (global
    # max pool, as in the TokenLearner paper) is implemented here.
    assert H_out == 1 and W_out == 1
    assert reduction in ("stack", "concat")

    B, T, C, H, W = x.shape
    S = N_tokens
    BT = B * T
    HW = H * W

    if frames_per_step is None:
        F = _pick_frames_per_step(BT, C)
    else:
        F = frames_per_step
        assert BT % F == 0
        assert (F * C) % 8 == 0 or F == BT
    n_steps = BT // F

    # Free reshape only -- no HBM transpose, no sublane padding in the block.
    x_flat = x.reshape(BT * C, HW).astype(jnp.float32)

    # Block-diagonal conv weight: one (9*F*S, F*C) @ (F*C, HW) matmul per grid
    # step replaces F tiny K=C matmuls.  Row t*F*S + f*S + s, col f*C + c
    # holds w[s, c, kh, kw] with t = kh*3 + kw (tap-major for batched shifts).
    w9 = jnp.transpose(conv_w.astype(jnp.float32), (2, 3, 0, 1)).reshape(9, S, C)
    eye_f = jnp.eye(F, dtype=jnp.float32)
    w_bd = jnp.einsum('tsc,fg->tfsgc', w9, eye_f).reshape(9 * F * S, F * C)

    # Conv bias tiled per frame -> (F*S, 1).
    b_col = jnp.tile(conv_b.astype(jnp.float32).reshape(1, S),
                     (F, 1)).reshape(F * S, 1)

    # Lane masks for the horizontal taps (built once in XLA, VMEM-resident).
    w_coord = jnp.arange(HW, dtype=jnp.int32) % W
    col_mask = jnp.stack(
        [(w_coord < (W - 1)).astype(jnp.float32),
         (w_coord >= 1).astype(jnp.float32)], axis=0)            # (2, HW)

    kernel = functools.partial(_token_extractor_kernel, H=H, W=W, C=C, S=S, F=F)

    cost = pl.CostEstimate(
        flops=int(2 * (9 * F * S) * (F * C) * HW * n_steps       # conv matmul
                  + 13 * F * S * HW * n_steps                    # tap combine
                  + 3 * S * C * HW * BT),                        # attn + pool
        transcendentals=int(BT * S * HW),                        # sigmoid
        bytes_accessed=int(x_flat.size * 4 + w_bd.size * 4
                           + n_steps * S * F * C * 4))

    out = pl.pallas_call(
        kernel,
        out_shape=jax.ShapeDtypeStruct((n_steps, S, F * C), jnp.float32),
        grid_spec=pltpu.PrefetchScalarGridSpec(
            num_scalar_prefetch=0,
            grid=(n_steps,),
            in_specs=[
                pl.BlockSpec((F * C, HW), lambda i: (i, 0)),
                pl.BlockSpec((9 * F * S, F * C), lambda i: (0, 0)),
                pl.BlockSpec((F * S, 1), lambda i: (0, 0)),
                pl.BlockSpec((2, HW), lambda i: (0, 0)),
            ],
            out_specs=pl.BlockSpec((1, S, F * C), lambda i: (i, 0, 0)),
        ),
        compiler_params=pltpu.CompilerParams(
            dimension_semantics=("parallel",),
        ),
        cost_estimate=cost,
    )(x_flat, w_bd, b_col, col_mask)                             # (n_steps, S, F*C)

    # Tiny wrapper-side layout plumbing (BT*S*C values): (step, S, F, C) ->
    # (step, F, S, C) -> (B, T, S, C).
    out = out.reshape(n_steps, S, F, C).transpose(0, 2, 1, 3).reshape(B, T, S, C)
    if reduction == "stack":
        # '(B T) S C 1 1 -> B T (S C) 1 1'
        return out.reshape(B, T, S * C, 1, 1)
    # '(B T) S C 1 1 -> B (T S) C 1 1'
    return out.reshape(B, T * S, C, 1, 1)


def token_extractor_reference(x, conv_w, conv_b, *, N_tokens, reduction="stack"):
    """Pure-JAX reference mirroring the PyTorch forward (H_out = W_out = 1)."""
    B, T, C, H, W = x.shape
    S = N_tokens
    xr = x.reshape(B * T, C, H, W)
    k = jax.lax.conv_general_dilated(
        xr, conv_w, window_strides=(1, 1), padding="SAME",
        dimension_numbers=("NCHW", "OIHW", "NCHW"))
    k = jax.nn.sigmoid(k + conv_b[None, :, None, None])          # (BT, S, H, W)
    prod = xr[:, None, :, :, :] * k[:, :, None, :, :]            # (BT, S, C, H, W)
    attn = prod.max(axis=(-1, -2))                               # (BT, S, C)
    attn = attn.reshape(B, T, S, C)
    if reduction == "stack":
        return attn.reshape(B, T, S * C, 1, 1)
    return attn.reshape(B, T * S, C, 1, 1)


if __name__ == "__main__":
    # Small shapes consistent with the module: B=2, T=2, C=4, H=W=16, S=8.
    B, T, C, H, W = 2, 2, 4, 16, 16
    S = 8  # N_tokens

    key = jax.random.PRNGKey(0)
    kx, kw, kb = jax.random.split(key, 3)

    x = jax.random.normal(kx, (B, T, C, H, W), dtype=jnp.float32)
    conv_w = 0.1 * jax.random.normal(kw, (S, C, 3, 3), dtype=jnp.float32)
    conv_b = 0.1 * jax.random.normal(kb, (S,), dtype=jnp.float32)

    out = token_extractor_forward(x, conv_w, conv_b, N_tokens=S,
                                  H_out=1, W_out=1, reduction="stack")
    out = jax.block_until_ready(out)

    ref = token_extractor_reference(x, conv_w, conv_b, N_tokens=S,
                                    reduction="stack")
    assert out.shape == (B, T, S * C, 1, 1), out.shape
    assert jnp.allclose(out, ref, atol=1e-5, rtol=1e-5), (
        float(jnp.max(jnp.abs(out - ref))))

    # Also exercise the 'concat' reduction path.
    out_c = token_extractor_forward(x, conv_w, conv_b, N_tokens=S,
                                    H_out=1, W_out=1, reduction="concat")
    out_c = jax.block_until_ready(out_c)
    ref_c = token_extractor_reference(x, conv_w, conv_b, N_tokens=S,
                                      reduction="concat")
    assert out_c.shape == (B, T * S, C, 1, 1), out_c.shape
    assert jnp.allclose(out_c, ref_c, atol=1e-5, rtol=1e-5), (
        float(jnp.max(jnp.abs(out_c - ref_c))))

    print("KERNEL_OK")
</pallas_src>

<mosaic_0001>
module attributes {stable_mosaic.version = 11 : i64} {
  func.func @_token_extractor_kernel(%arg0: i32, %arg1: memref<8x256xf32, #tpu.memory_space<vmem>>, %arg2: memref<144x8xf32, #tpu.memory_space<vmem>>, %arg3: memref<16x1xf32, #tpu.memory_space<vmem>>, %arg4: memref<2x256xf32, #tpu.memory_space<vmem>>, %arg5: memref<1x8x8xf32, #tpu.memory_space<vmem>>) attributes {dimension_semantics = [#tpu.dimension_semantics<parallel>], iteration_bounds = array<i64: 2>, scalar_prefetch = 0 : i64, scratch_operands = 0 : i64, tpu.core_type = #tpu.core_type<tc>, window_params = [{transform_indices = @transform_0, window_bounds = array<i64: 8, 256>}, {pipeline_mode = #tpu.pipeline_mode<synchronous>, transform_indices = @transform_1, window_bounds = array<i64: 144, 8>}, {pipeline_mode = #tpu.pipeline_mode<synchronous>, transform_indices = @transform_2, window_bounds = array<i64: 16, 1>}, {pipeline_mode = #tpu.pipeline_mode<synchronous>, transform_indices = @transform_3, window_bounds = array<i64: 2, 256>}, {transform_indices = @transform_4, window_bounds = array<i64: 1, 8, 8>}]} {
    %c0 = arith.constant 0 : index
    %c0_0 = arith.constant 0 : index
    %0 = vector.load %arg1[%c0, %c0_0] : memref<8x256xf32, #tpu.memory_space<vmem>>, vector<8x256xf32>
    %c0_1 = arith.constant 0 : index
    %c0_2 = arith.constant 0 : index
    %1 = vector.load %arg2[%c0_1, %c0_2] : memref<144x8xf32, #tpu.memory_space<vmem>>, vector<144x8xf32>
    %cst = arith.constant dense<0.000000e+00> : vector<144x256xf32>
    %2 = tpu.matmul %1, %0, %cst {dimension_numbers = #tpu.dot_dimension_numbers<[1], [0], [0], [1], [0, 0, 1, 1], [], []>} : vector<144x8xf32>, vector<8x256xf32>, vector<144x256xf32> -> vector<144x256xf32>
    %c0_3 = arith.constant 0 : index
    %c0_4 = arith.constant 0 : index
    %3 = vector.load %arg4[%c0_3, %c0_4] : memref<2x256xf32, #tpu.memory_space<vmem>>, vector<1x256xf32>
    %c1 = arith.constant 1 : index
    %c0_5 = arith.constant 0 : index
    %4 = vector.load %arg4[%c1, %c0_5] : memref<2x256xf32, #tpu.memory_space<vmem>>, vector<1x256xf32>
    %5 = vector.extract_strided_slice %2 {offsets = [0, 0], sizes = [16, 256], strides = [1, 1]} : vector<144x256xf32> to vector<16x256xf32>
    %cst_6 = arith.constant 0.000000e+00 : f32
    %6 = vector.broadcast %cst_6 : f32 to vector<16x17xf32>
    %7 = vector.extract_strided_slice %5 {offsets = [0, 0], sizes = [16, 239], strides = [1, 1]} : vector<16x256xf32> to vector<16x239xf32>
    %8 = tpu.concatenate %6, %7 in 1 : vector<16x17xf32>, vector<16x239xf32> -> vector<16x256xf32>
    %9 = vector.extract_strided_slice %2 {offsets = [48, 0], sizes = [16, 256], strides = [1, 1]} : vector<144x256xf32> to vector<16x256xf32>
    %cst_7 = arith.constant 0.000000e+00 : f32
    %10 = vector.broadcast %cst_7 : f32 to vector<16x1xf32>
    %11 = vector.extract_strided_slice %9 {offsets = [0, 0], sizes = [16, 255], strides = [1, 1]} : vector<16x256xf32> to vector<16x255xf32>
    %12 = tpu.concatenate %10, %11 in 1 : vector<16x1xf32>, vector<16x255xf32> -> vector<16x256xf32>
    %13 = arith.addf %8, %12 : vector<16x256xf32>
    %14 = vector.extract_strided_slice %2 {offsets = [96, 0], sizes = [16, 256], strides = [1, 1]} : vector<144x256xf32> to vector<16x256xf32>
    %cst_8 = arith.constant 0.000000e+00 : f32
    %15 = vector.broadcast %cst_8 : f32 to vector<16x15xf32>
    %16 = vector.extract_strided_slice %14 {offsets = [0, 15], sizes = [16, 241], strides = [1, 1]} : vector<16x256xf32> to vector<16x241xf32>
    %17 = tpu.concatenate %16, %15 in 1 : vector<16x241xf32>, vector<16x15xf32> -> vector<16x256xf32>
    %18 = arith.addf %13, %17 : vector<16x256xf32>
    %19 = vector.extract_strided_slice %2 {offsets = [16, 0], sizes = [16, 256], strides = [1, 1]} : vector<144x256xf32> to vector<16x256xf32>
    %cst_9 = arith.constant 0.000000e+00 : f32
    %20 = vector.broadcast %cst_9 : f32 to vector<16x16xf32>
    %21 = vector.extract_strided_slice %19 {offsets = [0, 0], sizes = [16, 240], strides = [1, 1]} : vector<16x256xf32> to vector<16x240xf32>
    %22 = tpu.concatenate %20, %21 in 1 : vector<16x16xf32>, vector<16x240xf32> -> vector<16x256xf32>
    %23 = vector.extract_strided_slice %2 {offsets = [64, 0], sizes = [16, 256], strides = [1, 1]} : vector<144x256xf32> to vector<16x256xf32>
    %24 = arith.addf %22, %23 : vector<16x256xf32>
    %25 = vector.extract_strided_slice %2 {offsets = [112, 0], sizes = [16, 256], strides = [1, 1]} : vector<144x256xf32> to vector<16x256xf32>
    %cst_10 = arith.constant 0.000000e+00 : f32
    %26 = vector.broadcast %cst_10 : f32 to vector<16x16xf32>
    %27 = vector.extract_strided_slice %25 {offsets = [0, 16], sizes = [16, 240], strides = [1, 1]} : vector<16x256xf32> to vector<16x240xf32>
    %28 = tpu.concatenate %27, %26 in 1 : vector<16x240xf32>, vector<16x16xf32> -> vector<16x256xf32>
    %29 = arith.addf %24, %28 : vector<16x256xf32>
    %30 = vector.extract_strided_slice %2 {offsets = [32, 0], sizes = [16, 256], strides = [1, 1]} : vector<144x256xf32> to vector<16x256xf32>
    %cst_11 = arith.constant 0.000000e+00 : f32
    %31 = vector.broadcast %cst_11 : f32 to vector<16x15xf32>
    %32 = vector.extract_strided_slice %30 {offsets = [0, 0], sizes = [16, 241], strides = [1, 1]} : vector<16x256xf32> to vector<16x241xf32>
    %33 = tpu.concatenate %31, %32 in 1 : vector<16x15xf32>, vector<16x241xf32> -> vector<16x256xf32>
    %34 = vector.extract_strided_slice %2 {offsets = [80, 0], sizes = [16, 256], strides = [1, 1]} : vector<144x256xf32> to vector<16x256xf32>
    %cst_12 = arith.constant 0.000000e+00 : f32
    %35 = vector.broadcast %cst_12 : f32 to vector<16x1xf32>
    %36 = vector.extract_strided_slice %34 {offsets = [0, 1], sizes = [16, 255], strides = [1, 1]} : vector<16x256xf32> to vector<16x255xf32>
    %37 = tpu.concatenate %36, %35 in 1 : vector<16x255xf32>, vector<16x1xf32> -> vector<16x256xf32>
    %38 = arith.addf %33, %37 : vector<16x256xf32>
    %39 = vector.extract_strided_slice %2 {offsets = [128, 0], sizes = [16, 256], strides = [1, 1]} : vector<144x256xf32> to vector<16x256xf32>
    %cst_13 = arith.constant 0.000000e+00 : f32
    %40 = vector.broadcast %cst_13 : f32 to vector<16x17xf32>
    %41 = vector.extract_strided_slice %39 {offsets = [0, 17], sizes = [16, 239], strides = [1, 1]} : vector<16x256xf32> to vector<16x239xf32>
    %42 = tpu.concatenate %41, %40 in 1 : vector<16x239xf32>, vector<16x17xf32> -> vector<16x256xf32>
    %43 = arith.addf %38, %42 : vector<16x256xf32>
    %44 = vector.broadcast %4 : vector<1x256xf32> to vector<16x256xf32>
    %45 = arith.mulf %18, %44 : vector<16x256xf32>
    %46 = arith.addf %45, %29 : vector<16x256xf32>
    %47 = vector.broadcast %3 : vector<1x256xf32> to vector<16x256xf32>
    %48 = arith.mulf %43, %47 : vector<16x256xf32>
    %49 = arith.addf %46, %48 : vector<16x256xf32>
    %c0_14 = arith.constant 0 : index
    %c0_15 = arith.constant 0 : index
    %50 = vector.load %arg3[%c0_14, %c0_15] : memref<16x1xf32, #tpu.memory_space<vmem>>, vector<16x1xf32>
    %51 = vector.broadcast %50 : vector<16x1xf32> to vector<16x256xf32>
    %52 = arith.addf %49, %51 : vector<16x256xf32>
    %53 = arith.negf %52 : vector<16x256xf32>
    %54 = math.exp %53 : vector<16x256xf32>
    %cst_16 = arith.constant 1.000000e+00 : f32
    %55 = vector.broadcast %cst_16 : f32 to vector<16x256xf32>
    %56 = arith.addf %55, %54 : vector<16x256xf32>
    %57 = arith.divf %55, %56 : vector<16x256xf32>
    %58 = vector.extract_strided_slice %57 {offsets = [0, 0], sizes = [8, 256], strides = [1, 1]} : vector<16x256xf32> to vector<8x256xf32>
    %59 = vector.extract_strided_slice %0 {offsets = [0, 0], sizes = [1, 256], strides = [1, 1]} : vector<8x256xf32> to vector<1x256xf32>
    %60 = vector.broadcast %59 : vector<1x256xf32> to vector<8x256xf32>
    %61 = arith.mulf %58, %60 : vector<8x256xf32>
    %cst_17 = arith.constant dense<0xFF800000> : vector<8xf32>
    %62 = vector.multi_reduction <maximumf>, %61, %cst_17 [1] : vector<8x256xf32> to vector<8xf32>
    %63 = vector.shape_cast %62 : vector<8xf32> to vector<8x1xf32>
    %64 = vector.extract_strided_slice %0 {offsets = [1, 0], sizes = [1, 256], strides = [1, 1]} : vector<8x256xf32> to vector<1x256xf32>
    %65 = vector.broadcast %64 : vector<1x256xf32> to vector<8x256xf32>
    %66 = arith.mulf %58, %65 : vector<8x256xf32>
    %cst_18 = arith.constant dense<0xFF800000> : vector<8xf32>
    %67 = vector.multi_reduction <maximumf>, %66, %cst_18 [1] : vector<8x256xf32> to vector<8xf32>
    %68 = vector.shape_cast %67 : vector<8xf32> to vector<8x1xf32>
    %69 = vector.extract_strided_slice %0 {offsets = [2, 0], sizes = [1, 256], strides = [1, 1]} : vector<8x256xf32> to vector<1x256xf32>
    %70 = vector.broadcast %69 : vector<1x256xf32> to vector<8x256xf32>
    %71 = arith.mulf %58, %70 : vector<8x256xf32>
    %cst_19 = arith.constant dense<0xFF800000> : vector<8xf32>
    %72 = vector.multi_reduction <maximumf>, %71, %cst_19 [1] : vector<8x256xf32> to vector<8xf32>
    %73 = vector.shape_cast %72 : vector<8xf32> to vector<8x1xf32>
    %74 = vector.extract_strided_slice %0 {offsets = [3, 0], sizes = [1, 256], strides = [1, 1]} : vector<8x256xf32> to vector<1x256xf32>
    %75 = vector.broadcast %74 : vector<1x256xf32> to vector<8x256xf32>
    %76 = arith.mulf %58, %75 : vector<8x256xf32>
    %cst_20 = arith.constant dense<0xFF800000> : vector<8xf32>
    %77 = vector.multi_reduction <maximumf>, %76, %cst_20 [1] : vector<8x256xf32> to vector<8xf32>
    %78 = vector.shape_cast %77 : vector<8xf32> to vector<8x1xf32>
    %79 = vector.extract_strided_slice %57 {offsets = [8, 0], sizes = [8, 256], strides = [1, 1]} : vector<16x256xf32> to vector<8x256xf32>
    %80 = vector.extract_strided_slice %0 {offsets = [4, 0], sizes = [1, 256], strides = [1, 1]} : vector<8x256xf32> to vector<1x256xf32>
    %81 = vector.broadcast %80 : vector<1x256xf32> to vector<8x256xf32>
    %82 = arith.mulf %79, %81 : vector<8x256xf32>
    %cst_21 = arith.constant dense<0xFF800000> : vector<8xf32>
    %83 = vector.multi_reduction <maximumf>, %82, %cst_21 [1] : vector<8x256xf32> to vector<8xf32>
    %84 = vector.shape_cast %83 : vector<8xf32> to vector<8x1xf32>
    %85 = vector.extract_strided_slice %0 {offsets = [5, 0], sizes = [1, 256], strides = [1, 1]} : vector<8x256xf32> to vector<1x256xf32>
    %86 = vector.broadcast %85 : vector<1x256xf32> to vector<8x256xf32>
    %87 = arith.mulf %79, %86 : vector<8x256xf32>
    %cst_22 = arith.constant dense<0xFF800000> : vector<8xf32>
    %88 = vector.multi_reduction <maximumf>, %87, %cst_22 [1] : vector<8x256xf32> to vector<8xf32>
    %89 = vector.shape_cast %88 : vector<8xf32> to vector<8x1xf32>
    %90 = vector.extract_strided_slice %0 {offsets = [6, 0], sizes = [1, 256], strides = [1, 1]} : vector<8x256xf32> to vector<1x256xf32>
    %91 = vector.broadcast %90 : vector<1x256xf32> to vector<8x256xf32>
    %92 = arith.mulf %79, %91 : vector<8x256xf32>
    %cst_23 = arith.constant dense<0xFF800000> : vector<8xf32>
    %93 = vector.multi_reduction <maximumf>, %92, %cst_23 [1] : vector<8x256xf32> to vector<8xf32>
    %94 = vector.shape_cast %93 : vector<8xf32> to vector<8x1xf32>
    %95 = vector.extract_strided_slice %0 {offsets = [7, 0], sizes = [1, 256], strides = [1, 1]} : vector<8x256xf32> to vector<1x256xf32>
    %96 = vector.broadcast %95 : vector<1x256xf32> to vector<8x256xf32>
    %97 = arith.mulf %79, %96 : vector<8x256xf32>
    %cst_24 = arith.constant dense<0xFF800000> : vector<8xf32>
    %98 = vector.multi_reduction <maximumf>, %97, %cst_24 [1] : vector<8x256xf32> to vector<8xf32>
    %99 = vector.shape_cast %98 : vector<8xf32> to vector<8x1xf32>
    %100 = tpu.concatenate %63, %68, %73, %78, %84, %89, %94, %99 in 1 : vector<8x1xf32>, vector<8x1xf32>, vector<8x1xf32>, vector<8x1xf32>, vector<8x1xf32>, vector<8x1xf32>, vector<8x1xf32>, vector<8x1xf32> -> vector<8x8xf32>
    %c0_25 = arith.constant 0 : index
    %c0_26 = arith.constant 0 : index
    %c0_27 = arith.constant 0 : index
    %101 = vector.load %arg5[%c0_25, %c0_26, %c0_27] : memref<1x8x8xf32, #tpu.memory_space<vmem>>, vector<1x8x8xf32>
    %102 = vector.shape_cast %101 : vector<1x8x8xf32> to vector<8x8xf32>
    %103 = vector.shape_cast %100 : vector<8x8xf32> to vector<1x8x8xf32>
    tpu.vector_store %arg5[%c0_25, %c0_26, %c0_27], %103 {strides = array<i32>} : memref<1x8x8xf32, #tpu.memory_space<vmem>>, vector<1x8x8xf32>,
    return
  }
  func.func @transform_0(%arg0: i32) -> (i32, i32) {
    %c0_i32 = arith.constant 0 : i32
    %c0_i32_0 = arith.constant 0 : i32
    return %arg0, %c0_i32 : i32, i32
  }
  func.func @transform_1(%arg0: i32) -> (i32, i32) {
    %c0_i32 = arith.constant 0 : i32
    %c0_i32_0 = arith.constant 0 : i32
    %c0_i32_1 = arith.constant 0 : i32
    return %c0_i32, %c0_i32_0 : i32, i32
  }
  func.func @transform_2(%arg0: i32) -> (i32, i32) {
    %c0_i32 = arith.constant 0 : i32
    %c0_i32_0 = arith.constant 0 : i32
    %c0_i32_1 = arith.constant 0 : i32
    return %c0_i32, %c0_i32_0 : i32, i32
  }
  func.func @transform_3(%arg0: i32) -> (i32, i32) {
    %c0_i32 = arith.constant 0 : i32
    %c0_i32_0 = arith.constant 0 : i32
    %c0_i32_1 = arith.constant 0 : i32
    return %c0_i32, %c0_i32_0 : i32, i32
  }
  func.func @transform_4(%arg0: i32) -> (i32, i32, i32) {
    %c0_i32 = arith.constant 0 : i32
    %c0_i32_0 = arith.constant 0 : i32
    %c0_i32_1 = arith.constant 0 : i32
    return %arg0, %c0_i32, %c0_i32_0 : i32, i32, i32
  }
}

</mosaic_0001>

<bundles_post_ra>
// kernel: tpu_custom_call.1
= control target key start
LH: loop header
LB: loop body
LE: loop exit
PB: predicated region body
PF: predicated region fallthrough
CT: control target
= control target key end

     0   :  { %9 = vsyncpa [#allocation3], 0  ;;  %s1442_s0 = inlined_call_operand.vmem [shape: f32[16,256], index: 0, kind: input, shape index: {}]   ;;  %s1443_s1 = inlined_call_operand.vmem [shape: f32[144,8], index: 1, kind: input, shape index: {}]   ;;  %s1444_s2 = inlined_call_operand.vmem [shape: f32[16,1], index: 2, kind: input, shape index: {}]   ;;  %s1445_s3 = inlined_call_operand.vmem [shape: f32[2,256], index: 3, kind: input, shape index: {}]   ;;  %s1446_s4 = inlined_call_operand.hbm [shape: f32[2,8,8], index: 4, kind: output, shape index: {}]  }
   0x1   :  { %11 = vsyncpa [#allocation3 + $0x1], 0  ;;  %s1111_s15 = smov 0   ;;  %s1113_s16 = smov 0  }
   0x2   :  { %s1115_s17 = smov 0   ;;  %s1117_s18 = smov 0  }
   0x3 LB: > { %s1132_s19 = sadd.s32 4294967295, %s1073_s18   ;;  %s908_s20 = sadd.s32 4294967294, %s1073_s18   ;;  %s1073_s18 = sphi %s1117_s18, %s1452_s18   ;;  %s1069_s17 = sphi %s1115_s17, %s1451_s17   ;;  %s1065_s16 = sphi %s1113_s16, %s1450_s16   ;;  %s1061_s15 = sphi %s1111_s15, %s1449_s15  }
   0x4   : > { %s1136_s21 = sadd.s32 1, %s1073_s18   ;;  %s113_s22 = sadd.s32 1, %s1069_s17 }
   0x5   : > { %s110_s23 = ssub.s32 %s1073_s18, %s1136_s21  ;;  %p123_p0 = scmp.ne.s32.totalorder %s1069_s17, %s1065_s16 }
   0x6   : > { %p111_p1 = scmp.eq.s32.totalorder %s110_s23, 0  ;;  %p124_p2 = scmp.eq.s32.totalorder %s1132_s19, 1 }
   0x7   : > { %p129_p3 = scmp.ne.s32.totalorder %s1065_s16, %s1061_s15  ;;  %p130_p4 = scmp.eq.s32.totalorder %s908_s20, 1 }
   0x8   : > { %s1147_s24 = scalar_select %p111_p1, %s1069_s17, %s113_s22  }
   0x9   : > { %p1149_p5 = por %p124_p2, %p123_p0  ;;  %p1153_p6 = por %p130_p4, %p129_p3 }
   0xa   : > { %p911_p7 = scmp.ge.s32.totalorder %s1073_s18, 1  ;;  %p165_p8 = scmp.lt.s32.totalorder %s1073_s18, 3 }
   0xc   : > { %p166_p9 = pnand %p911_p7, %p165_p8 }
   0xd   : > { %p191_p10 = scmp.lt.s32.totalorder (!%p166_p9), %s1132_s19, 1  ;;  %v1075_v0 = vmov (!%p166_p9), 0.0   ;;  %v1076_v1 = vmov (!%p166_p9), 0   ;;  %v198_v2 = vld [vmem:[%s1443_s1] sm:$0xff] (!%p166_p9)  ;;  %vm216_vm0 = vcmask (!%p166_p9), 64512   ;;  %v207_v5 = vld [vmem:[%s1443_s1 + $0x48] sm:$0xff] (!%p166_p9) }
   0xe   : > { %169 = sbr.rel (%p166_p9) target bundleno = 630 (0x276), region = 36  ;;  %335 = vmatprep.mubr.f32.mxu0 (!%p166_p9), %v1075_v0  ;;  %389 = vmatprep.mubr.f32.mxu1 (!%p166_p9), %v1075_v0  ;;  %v677_v6 = vld [vmem:[%s1444_s2] sm:$0xff] (!%p166_p9)  ;;  %v208_v7 = vld [vmem:[%s1443_s1 + $0x50] sm:$0xff] (!%p166_p9)  ;;  %v199_v8 = vld [vmem:[%s1443_s1 + $0x8] sm:$0xff] (!%p166_p9)  ;;  %s1077_s10 = smov (!%p166_p9), 17   ;;  %vm480_vm1 = vcmask (!%p166_p9), 7168  }
   0xf   : > { %994 = vset.pattern.permute.xlu0 (!%p166_p9), %v1076_v1  ;;  %v200_v9 = vld [vmem:[%s1443_s1 + $0x10] sm:$0xff] (!%p166_p9)  ;;  %v209_v10 = vld [vmem:[%s1443_s1 + $0x58] sm:$0xff] (!%p166_p9)  ;;  %v210_v11 = vld [vmem:[%s1443_s1 + $0x60] sm:$0xff] (!%p166_p9)  ;;  %s1078_s11 = smov (!%p166_p9), 127   ;;  %s1079_s12 = smov (!%p166_p9), 16   ;;  %vm530_vm2 = vcmask (!%p166_p9), 130048  }
  0x10   : > { %681 = vperm.xlu0 (!%p166_p9), %994, %v677_v6   ;;  %v201_v12 = vld [vmem:[%s1443_s1 + $0x18] sm:$0xff] (!%p166_p9)  ;;  %v211_v13 = vld [vmem:[%s1443_s1 + $0x68] sm:$0xff] (!%p166_p9)  ;;  %v202_v14 = vld [vmem:[%s1443_s1 + $0x20] sm:$0xff] (!%p166_p9)  ;;  %s1080_s13 = smov (!%p166_p9), 113   ;;  %s1081_s14 = smov (!%p166_p9), 15   ;;  %vm459_vm3 = vcmask (!%p166_p9), 138240  }
  0x11   : > { %v212_v15 = vld [vmem:[%s1443_s1 + $0x70] sm:$0xff] (!%p166_p9)  ;;  %v203_v16 = vld [vmem:[%s1443_s1 + $0x28] sm:$0xff] (!%p166_p9)  ;;  %v213_v18 = vld [vmem:[%s1443_s1 + $0x78] sm:$0xff] (!%p166_p9)  ;;  %s1082_s20 = smov (!%p166_p9), 112   ;;  %s1083_s22 = smov (!%p166_p9), 1   ;;  %vm601_vm4 = vcmask (!%p166_p9), 1039360  }
  0x12   : > { %v204_v17 = vld [vmem:[%s1443_s1 + $0x30] sm:$0xff] (!%p166_p9)  ;;  %v205_v19 = vld [vmem:[%s1443_s1 + $0x38] sm:$0xff] (!%p166_p9)  ;;  %v214_v20 = vld [vmem:[%s1443_s1 + $0x80] sm:$0xff] (!%p166_p9)  ;;  %s1084_s23 = smov (!%p166_p9), 111   ;;  %vm505_vm5 = vcmask (!%p166_p9), 924672   ;;  %vm580_vm6 = vcmask (!%p166_p9), 121856  }
  0x13   : > { %v215_v21 = vld [vmem:[%s1443_s1 + $0x88] sm:$0xff] (!%p166_p9)  ;;  %v206_v22 = vld [vmem:[%s1443_s1 + $0x40] sm:$0xff] (!%p166_p9)  ;;  %vm555_vm7 = vcmask (!%p166_p9), 916480   ;;  %vm626_vm8 = vcmask (!%p166_p9), 908288   ;;  %s188_s7 = sand.u32 (!%p166_p9), 1, %s1065_s16   ;;  %vm822_vm9 = vcmask (!%p166_p9), 15360  }
  0x14   : > { %v678_v59 = vld [vmem:[%s1444_s2 + $0x8] sm:$0xff] (!%p166_p9)  ;;  %s912_s8 = sshll.u32 (!%p166_p9), %s188_s7, 3  ;;  %vm824_vm10 = vcmask (!%p166_p9), 23552   ;;  %vm826_vm11 = vcmask (!%p166_p9), 31744   ;;  %vm828_vm12 = vcmask (!%p166_p9), 39936   ;;  %vm830_vm13 = vcmask (!%p166_p9), 48128  }
  0x15   : > { %s192_s27 = scalar_select %p191_p10, %s1132_s19, 1  ;;  %vm832_vm14 = vcmask 56320  }
  0x16   : > { %s939_s9 = sshll.u32 %s1132_s19, 7  ;;  %s836_s19 = scalar_lea.sflag [#allocation3], %s188_s7 }
  0x17   : > { %s942_s28 = sshll.u32 %s192_s27, 4 }
  0x18   : > { %s195_s5 = scalar_lea.vmem %s1442_s0, %s942_s28 }
  0x19   : > { %v1169_v3 = vld [vmem:[%s195_s5 + $0x8] sm:$0xff]  ;;  %v1171_v4 = vld [vmem:[%s195_s5] sm:$0xff] }
  0x1a   : > { %271 = vmatprep.subr.mxu0 %v1169_v3  ;;  %943 = vmatprep.subr.mxu1 %v1169_v3 }
  0x1b   : > { %272 = vmatpush1.msra.mxu0 %v1171_v4  ;;  %944 = vmatpush1.msra.mxu1 %v1171_v4 }
  0x1c   : > { %915 = vmatmul.mubr.msk.f32.vlgmr.msra.gmra.mrb[0].mxu0 %vm216_vm0, %v198_v2  ;;  %924 = vmatmul.mubr.msk.f32.vlgmr.msra.gmra.mrb[0].mxu1 %vm216_vm0, %v207_v5 }
  0x1d   : > { %395 = vmatprep.mubr.f32.mxu1 %v1075_v0  ;;  %341 = vmatprep.mubr.f32.mxu0 %v1075_v0 }
  0x20   : > { %925 = vmatmul.mubr.msk.f32.gmra.mrb[2].mxu1 %vm216_vm0, %v208_v7  ;;  %916 = vmatmul.mubr.msk.f32.gmra.mrb[2].mxu0 %vm216_vm0, %v199_v8 }
  0x21   : > { %347 = vmatprep.mubr.f32.mxu0 %v1075_v0  ;;  %401 = vmatprep.mubr.f32.mxu1 %v1075_v0 }
  0x24   : > { %917 = vmatmul.mubr.msk.f32.gmra.mrb[4].mxu0 %vm216_vm0, %v200_v9  ;;  %926 = vmatmul.mubr.msk.f32.gmra.mrb[4].mxu1 %vm216_vm0, %v209_v10 }
  0x25   : > { %407 = vmatprep.mubr.f32.mxu1 %v1075_v0  ;;  %353 = vmatprep.mubr.f32.mxu0 %v1075_v0 }
  0x28   : > { %927 = vmatmul.mubr.msk.f32.gmra.mrb[6].mxu1 %vm216_vm0, %v210_v11  ;;  %918 = vmatmul.mubr.msk.f32.gmra.mrb[6].mxu0 %vm216_vm0, %v201_v12 }
  0x29   : > { %413 = vmatprep.mubr.f32.mxu1 %v1075_v0  ;;  %359 = vmatprep.mubr.f32.mxu0 %v1075_v0 }
  0x2c   : > { %928 = vmatmul.mubr.msk.f32.gmra.mrb[8].mxu1 %vm216_vm0, %v211_v13  ;;  %919 = vmatmul.mubr.msk.f32.gmra.mrb[8].mxu0 %vm216_vm0, %v202_v14 }
  0x2d   : > { %419 = vmatprep.mubr.f32.mxu1 %v1075_v0  ;;  %365 = vmatprep.mubr.f32.mxu0 %v1075_v0 }
  0x30   : > { %929 = vmatmul.mubr.msk.f32.gmra.mrb[10].mxu1 %vm216_vm0, %v212_v15  ;;  %920 = vmatmul.mubr.msk.f32.gmra.mrb[10].mxu0 %vm216_vm0, %v203_v16 }
  0x31   : > { %371 = vmatprep.mubr.f32.mxu0 %v1075_v0  ;;  %425 = vmatprep.mubr.f32.mxu1 %v1075_v0 }
  0x34   : > { %921 = vmatmul.mubr.msk.f32.gmra.mrb[12].mxu0 %vm216_vm0, %v204_v17  ;;  %930 = vmatmul.mubr.msk.f32.gmra.mrb[12].mxu1 %vm216_vm0, %v213_v18 }
  0x35   : > { %377 = vmatprep.mubr.f32.mxu0 %v1075_v0  ;;  %431 = vmatprep.mubr.f32.mxu1 %v1075_v0 }
  0x38   : > { %922 = vmatmul.mubr.msk.f32.gmra.mrb[14].mxu0 %vm216_vm0, %v205_v19  ;;  %931 = vmatmul.mubr.msk.f32.gmra.mrb[14].mxu1 %vm216_vm0, %v214_v20  ;;  %v640_v19 = vlaneseq }
  0x39   : > { %437 = vmatprep.mubr.f32.mxu1 %v1075_v0  ;;  %383 = vmatprep.mubr.f32.mxu0 %v1075_v0 }
  0x3c   : > { %932 = vmatmul.mubr.msk.f32.gmra.mrb[16].mxu1 %vm216_vm0, %v215_v21  ;;  %923 = vmatmul.mubr.msk.f32.gmra.mrb[16].mxu0 %vm216_vm0, %v206_v22  ;;  %v1288_v22 = vshrl.u32 %v640_v19, 7 }
  0x8f   : > { %v1276_v60 = vpop.permute.xlu0 %681 }
  0xef   : > { %v337_v23 = vpop.f32.mrb[0].mxu0  ;;  %v1265_v24 = vpop.f32.mrb[0].mxu1 }
  0xf0   : > { %v1267_v25 = vpop.f32.mrb[1].mxu1  ;;  %451 = vrot.lane.b32.xlu0 %v337_v23, %s1077_s10  ;;  %v339_v26 = vpop.f32.mrb[1].mxu0 }
  0xf3   : > { %v397_v27 = vpop.f32.mrb[2].mxu1  ;;  %v343_v28 = vpop.f32.mrb[2].mxu0 }
  0xf4   : > { %v399_v29 = vpop.f32.mrb[3].mxu1  ;;  %453 = vrot.lane.b32.xlu0 %v339_v26, %s1077_s10  ;;  %v345_v30 = vpop.f32.mrb[3].mxu0 }
  0xf5   : > { %595 = vrot.lane.b32.xlu1 %v399_v29, %s1078_s11  ;;  %v1299_v29 = vsub.s32 1, %v1288_v22 }
  0xf7   : > { %v349_v31 = vpop.f32.mrb[4].mxu0  ;;  %v403_v32 = vpop.f32.mrb[4].mxu1 }
  0xf8   : > { %593 = vrot.lane.b32.xlu0 %v397_v27, %s1078_s11  ;;  %v351_v33 = vpop.f32.mrb[5].mxu0  ;;  %v405_v34 = vpop.f32.mrb[5].mxu1  ;;  %v1293_v27 = vsub.s32 0, %v1288_v22 }
  0xf9   : > { %457 = vrot.lane.b32.xlu1 %v345_v30, %s1077_s10  ;;  %v444_v30 = vld [vmem:[%s1445_s3] ss:$2 sm:$0x3] }
  0xfb   : > { %v409_v35 = vpop.f32.mrb[6].mxu1  ;;  %v355_v36 = vpop.f32.mrb[6].mxu0 }
  0xfc   : > { %455 = vrot.lane.b32.xlu0 %v343_v28, %s1077_s10  ;;  %v411_v37 = vpop.f32.mrb[7].mxu1  ;;  %v357_v38 = vpop.f32.mrb[7].mxu0  ;;  %v933_v28 = vld [vmem:[%s1445_s3 + $0x1] ss:$2 sm:$0x3]  ;;  %s190_s10 = scalar_lea.vmem [#allocation2], %s912_s8 }
  0xfd   : > { %524 = vrot.lane.b32.xlu1 %v351_v33, %s1079_s12 }
  0xff   : > { %v415_v39 = vpop.f32.mrb[8].mxu1  ;;  %v361_v40 = vpop.f32.mrb[8].mxu0 }
 0x100   : > { %522 = vrot.lane.b32.xlu0 %v349_v31, %s1079_s12  ;;  %v417_v41 = vpop.f32.mrb[9].mxu1  ;;  %v363_v42 = vpop.f32.mrb[9].mxu0 }
 0x101   : > { %599 = vrot.lane.b32.xlu1 %v405_v34, %s1078_s11 }
 0x103   : > { %v421_v43 = vpop.f32.mrb[10].mxu1  ;;  %v367_v44 = vpop.f32.mrb[10].mxu0 }
 0x104   : > { %597 = vrot.lane.b32.xlu0 %v403_v32, %s1078_s11  ;;  %v423_v45 = vpop.f32.mrb[11].mxu1  ;;  %v369_v46 = vpop.f32.mrb[11].mxu0  ;;  %v1305_v32 = vrot.slane %v933_v28, %v1293_v27  ;;  %s849_s11 = sshll.u32 %s190_s10, 4  ;;  %s1401_s11 = int_to_ptr.vmem [resolvable:$true] %s849_s11 }
 0x105   : > { %499 = vrot.lane.b32.xlu1 %v411_v37, %s1080_s13  ;;  %v1312_v37 = vrot.slane %v444_v30, %v1293_v27 }
 0x107   : > { %v427_v47 = vpop.f32.mrb[12].mxu1  ;;  %v373_v48 = vpop.f32.mrb[12].mxu0 }
 0x108   : > { %497 = vrot.lane.b32.xlu0 %v409_v35, %s1080_s13  ;;  %v375_v49 = vpop.f32.mrb[13].mxu0  ;;  %v429_v50 = vpop.f32.mrb[13].mxu1 }
 0x109   : > { %528 = vrot.lane.b32.xlu1 %v357_v38, %s1079_s12 }
 0x10b   : > { %v379_v51 = vpop.f32.mrb[14].mxu0  ;;  %v433_v52 = vpop.f32.mrb[14].mxu1 }
 0x10c   : > { %526 = vrot.lane.b32.xlu0 %v355_v36, %s1079_s12  ;;  %v381_v53 = vpop.f32.mrb[15].mxu0  ;;  %v435_v54 = vpop.f32.mrb[15].mxu1  ;;  %v647_v36 = vrot.slane %v933_v28, %v1299_v29 }
 0x10d   : > { %501 = vrot.lane.b32.xlu1 %v415_v39, %s1080_s13 }
 0x10f   : > { %v439_v55 = vpop.f32.mrb[16].mxu1  ;;  %v1269_v56 = vpop.f32.mrb[16].mxu0 }
 0x110   : > { %572 = vrot.lane.b32.xlu0 %v361_v40, %s1081_s14  ;;  %v441_v57 = vpop.f32.mrb[17].mxu1  ;;  %v1271_v58 = vpop.f32.mrb[17].mxu0 }
 0x111   : > { %574 = vrot.lane.b32.xlu1 %v363_v42, %s1081_s14  ;;  %v1318_v42 = vrot.slane %v444_v30, %v1299_v29 }
 0x114   : > { %547 = vrot.lane.b32.xlu0 %v421_v43, %s1082_s20 }
 0x115   : > { %503 = vrot.lane.b32.xlu1 %v417_v41, %s1080_s13 }
 0x118   : > { %576 = vrot.lane.b32.xlu0 %v367_v44, %s1081_s14 }
 0x119   : > { %549 = vrot.lane.b32.xlu1 %v423_v45, %s1082_s20 }
 0x11c   : > { %551 = vrot.lane.b32.xlu0 %v427_v47, %s1082_s20 }
 0x11d   : > { %578 = vrot.lane.b32.xlu1 %v369_v46, %s1081_s14  ;;  %s1399_s14 = scalar_lea.hbm %s1446_s4, %s939_s9 }
 0x120   : > { %476 = vrot.lane.b32.xlu0 %v379_v51, %s1083_s22 }
 0x121   : > { %472 = vrot.lane.b32.xlu1 %v373_v48, %s1083_s22 }
 0x124   : > { %618 = vrot.lane.b32.xlu0 %v433_v52, %s1084_s23 }
 0x125   : > { %474 = vrot.lane.b32.xlu1 %v375_v49, %s1083_s22 }
 0x128   : > { %622 = vrot.lane.b32.xlu0 %v439_v55, %s1084_s23 }
 0x129   : > { %553 = vrot.lane.b32.xlu1 %v429_v50, %s1082_s20  ;;  %s1011_s20 = scalar_lea.vmem %s1401_s11, 128 }
 0x12a   : > { %p1012_p11 = scmp.ne.s32.totalorder %s1401_s11, %s1011_s20 }
 0x12c   : > { %686 = vperm.xlu0 %994, %v678_v59   ;;  %p1013_p12 = pnand %p1012_p11, %p1149_p5 }
 0x12d   : > { %478 = vrot.lane.b32.xlu1 %v381_v53, %s1083_s22  ;;  %s1085_s22 = smov [#allocation2]  }
 0x12e   : > { %p1014_p13 = pneg %p1013_p12 }
 0x131   : > { %620 = vrot.lane.b32.xlu1 %v435_v54, %s1084_s23 }
 0x135   : > { %624 = vrot.lane.b32.xlu1 %v441_v57, %s1084_s23  ;;  %s1015_s23 = sshll.u32 %s1085_s22, 4  ;;  %s1016_s23 = int_to_ptr.vmem [resolvable:$false] %s1015_s23 }
 0x136   : > { %s1017_s27 = scalar_lea.vmem %s1016_s23, 256  ;;  %p1018_p0 = scmp.lt.s32.totalorder %s1401_s11, %s1016_s23 }
 0x137   : > { %p1019_p1 = scmp.lt.s32.totalorder %s1017_s27, %s1011_s20 }
 0x139   : > { %p1020_p2 = por %p1019_p1, %p1018_p0 }
 0x13b   : > { %p1021_p3 = pnand %p1020_p2, %p1014_p13 }
 0x162   : > { %v452_v61 = vpop.permute.xlu0 %451 }
 0x163   : > { %v466_v38 = vsel %vm459_vm3, 0.0, %v452_v61 }
 0x166   : > { %v454_v62 = vpop.permute.xlu0 %453 }
 0x167   : > { %v596_v63 = vpop.permute.xlu1 %595  ;;  %v460_v39 = vsel %vm459_vm3, %v452_v61, %v454_v62 }
 0x168   : > { %v608_v40 = vsel %vm601_vm4, %v596_v63, 0.0 }
 0x16a   : > { %v594_v0 = vpop.permute.xlu0 %593 }
 0x16b   : > { %v458_v1 = vpop.permute.xlu1 %457  ;;  %v602_v43 = vsel %vm601_vm4, %v594_v0, %v596_v63 }
 0x16e   : > { %v456_v2 = vpop.permute.xlu0 %455 }
 0x16f   : > { %v525_v5 = vpop.permute.xlu1 %524  ;;  %v461_v48 = vsel %vm459_vm3, %v456_v2, %v458_v1  ;;  %v467_v49 = vsel %vm459_vm3, 0.0, %v456_v2 }
 0x172   : > { %v523_v6 = vpop.permute.xlu0 %522 }
 0x173   : > { %v600_v7 = vpop.permute.xlu1 %599  ;;  %v537_v35 = vsel %vm530_vm2, 0.0, %v523_v6  ;;  %v531_v44 = vsel %vm530_vm2, %v523_v6, %v525_v5 }
 0x174   : > { %v539_v50 = vadd.f32 %v537_v35, %v1269_v56  ;;  %v609_v52 = vsel %vm601_vm4, %v600_v7, 0.0  ;;  %v540_v57 = vadd.f32 %v531_v44, %v1271_v58 }
 0x176   : > { %v598_v8 = vpop.permute.xlu0 %597 }
 0x177   : > { %v500_v9 = vpop.permute.xlu1 %499  ;;  %v603_v56 = vsel %vm601_vm4, %v598_v8, %v600_v7 }
 0x178   : > { %v512_v59 = vsel %vm505_vm5, %v500_v9, 0.0 }
 0x17a   : > { %v498_v10 = vpop.permute.xlu0 %497 }
 0x17b   : > { %v529_v11 = vpop.permute.xlu1 %528  ;;  %v506_v61 = vsel %vm505_vm5, %v498_v10, %v500_v9 }
 0x17e   : > { %v527_v12 = vpop.permute.xlu0 %526 }
 0x17f   : > { %v1278_v13 = vpop.permute.xlu1 %501  ;;  %v538_v51 = vsel %vm530_vm2, 0.0, %v527_v12  ;;  %v532_v53 = vsel %vm530_vm2, %v527_v12, %v529_v11 }
 0x180   : > { %v541_v63 = vadd.f32 %v538_v51, %v1265_v24  ;;  %v542_v5 = vadd.f32 %v532_v53, %v1267_v25 }
 0x182   : > { %v573_v14 = vpop.permute.xlu0 %572 }
 0x183   : > { %v575_v15 = vpop.permute.xlu1 %574  ;;  %v587_v54 = vsel %vm580_vm6, 0.0, %v573_v14 }
 0x184   : > { %v581_v62 = vsel %vm580_vm6, %v573_v14, %v575_v15  ;;  %v610_v6 = vadd.f32 %v602_v43, %v587_v54 }
 0x185   : > { %v611_v58 = vadd.f32 %v608_v40, %v581_v62 }
 0x186   : > { %v548_v17 = vpop.permute.xlu0 %547 }
 0x187   : > { %v1280_v16 = vpop.permute.xlu1 %503 }
 0x188   : > { %v507_v9 = vsel %vm505_vm5, %v1278_v13, %v1280_v16  ;;  %v513_v24 = vsel %vm505_vm5, %v1280_v16, 0.0 }
 0x18a   : > { %v1284_v20 = vpop.permute.xlu0 %576 }
 0x18b   : > { %v1282_v18 = vpop.permute.xlu1 %549  ;;  %v588_v25 = vsel %vm580_vm6, 0.0, %v1284_v20 }
 0x18c   : > { %v556_v10 = vsel %vm555_vm7, %v548_v17, %v1282_v18  ;;  %v562_v14 = vsel %vm555_vm7, %v1282_v18, 0.0 }
 0x18d   : > { %v564_v30 = vadd.f32 %v556_v10, %v539_v50 }
 0x18e   : > { %v1290_v26 = vpop.permute.xlu0 %551 }
 0x18f   : > { %v1286_v21 = vpop.permute.xlu1 %578 }
 0x190   : > { %v582_v15 = vsel %vm580_vm6, %v1284_v20, %v1286_v21  ;;  %v612_v20 = vadd.f32 %v603_v56, %v588_v25  ;;  %v771_v25 = vsub.s32 4, %v1288_v22 }
 0x191   : > { %v613_v21 = vadd.f32 %v609_v52, %v582_v15  ;;  %v797_v15 = vsub.s32 6, %v1288_v22 }
 0x192   : > { %v477_v41 = vpop.permute.xlu0 %476 }
 0x193   : > { %v473_v23 = vpop.permute.xlu1 %472  ;;  %v488_v55 = vsel %vm480_vm1, 0.0, %v477_v41 }
 0x194   : > { %v487_v33 = vsel %vm480_vm1, 0.0, %v473_v23  ;;  %v491_v11 = vadd.f32 %v488_v55, %v467_v49 }
 0x195   : > { %v489_v45 = vadd.f32 %v487_v33, %v466_v38 }
 0x196   : > { %v619_v7 = vpop.permute.xlu0 %618  ;;  %v516_v16 = vadd.f32 %v507_v9, %v491_v11 }
 0x197   : > { %v475_v31 = vpop.permute.xlu1 %474  ;;  %v514_v0 = vadd.f32 %v506_v61, %v489_v45 }
 0x198   : > { %v481_v34 = vsel %vm480_vm1, %v473_v23, %v475_v31  ;;  %v652_v49 = vmul.f32 %v1305_v32, %v516_v16  ;;  %v724_v16 = vrot.slane %v1169_v3, %v1293_v27 }
 0x199   : > { %v490_v46 = vadd.f32 %v481_v34, %v460_v39  ;;  %v650_v13 = vmul.f32 %v1305_v32, %v514_v0  ;;  %v565_v34 = vadd.f32 %v562_v14, %v540_v57  ;;  %v784_v14 = vsub.s32 5, %v1288_v22 }
 0x19b   : > { %v554_v47 = vpop.permute.xlu1 %553  ;;  %v515_v1 = vadd.f32 %v512_v59, %v490_v46  ;;  %v654_v43 = vadd.f32 %v650_v13, %v564_v30  ;;  %v810_v13 = vsub.s32 7, %v1288_v22  ;;  %v737_v30 = vrot.slane %v1169_v3, %v1299_v29 }
 0x19c   : > { %v557_v17 = vsel %vm555_vm7, %v1290_v26, %v554_v47  ;;  %v563_v18 = vsel %vm555_vm7, %v554_v47, 0.0 }
 0x19d   : > { %v651_v19 = vmul.f32 %v647_v36, %v515_v1  ;;  %v566_v39 = vadd.f32 %v557_v17, %v541_v63  ;;  %v720_v17 = vrot.slane %v1171_v4, %v1293_v27 }
 0x19f   : > { %v479_v2 = vpop.permute.xlu1 %478  ;;  %v655_v26 = vadd.f32 %v651_v19, %v565_v34  ;;  %v733_v19 = vrot.slane %v1171_v4, %v1299_v29  ;;  %v776_v34 = vrot.slane %v1169_v3, %v771_v25  ;;  %v802_v29 = vrot.slane %v1169_v3, %v797_v15 }
 0x1a0   : > { %v482_v12 = vsel %vm480_vm1, %v477_v41, %v479_v2  ;;  %v623_v41 = vpop.permute.xlu0 %622 }
 0x1a1   : > { %v492_v8 = vadd.f32 %v482_v12, %v461_v48  ;;  %v567_v48 = vadd.f32 %v563_v18, %v542_v5  ;;  %v785_v18 = vrot.slane %v1171_v4, %v784_v14 }
 0x1a3   : > { %v517_v23 = vadd.f32 %v513_v24, %v492_v8  ;;  %v621_v28 = vpop.permute.xlu1 %620  ;;  %v745_v8 = vsub.s32 2, %v1288_v22  ;;  %v758_v24 = vsub.s32 3, %v1288_v22 }
 0x1a4   : > { %v627_v31 = vsel %vm626_vm8, %v619_v7, %v621_v28  ;;  %v633_v33 = vsel %vm626_vm8, %v621_v28, 0.0 }
 0x1a5   : > { %v635_v35 = vadd.f32 %v627_v31, %v610_v6  ;;  %v636_v38 = vadd.f32 %v633_v33, %v611_v58  ;;  %v653_v40 = vmul.f32 %v647_v36, %v517_v23  ;;  %v656_v36 = vadd.f32 %v652_v49, %v566_v39 }
 0x1a6   : > { %v746_v23 = vrot.slane %v1171_v4, %v745_v8  ;;  %v759_v28 = vrot.slane %v1171_v4, %v758_v24  ;;  %v750_v31 = vrot.slane %v1169_v3, %v745_v8  ;;  %v763_v22 = vrot.slane %v1169_v3, %v758_v24 }
 0x1a7   : > { %v669_v44 = vmul.f32 %v1312_v37, %v635_v35  ;;  %v670_v45 = vmul.f32 %v1318_v42, %v636_v38  ;;  %v625_v46 = vpop.permute.xlu1 %624  ;;  %v657_v55 = vadd.f32 %v653_v40, %v567_v48  ;;  %v772_v33 = vrot.slane %v1171_v4, %v771_v25 }
 0x1a8   : > { %v628_v50 = vsel %vm626_vm8, %v623_v41, %v625_v46  ;;  %v634_v47 = vsel %vm626_vm8, %v625_v46, 0.0  ;;  %v789_v38 = vrot.slane %v1169_v3, %v784_v14  ;;  %v815_v48 = vrot.slane %v1169_v3, %v810_v13 }
 0x1a9   : > { %v673_v51 = vadd.f32 %v669_v44, %v654_v43  ;;  %v674_v53 = vadd.f32 %v670_v45, %v655_v26  ;;  %v637_v52 = vadd.f32 %v628_v50, %v612_v20  ;;  %v638_v54 = vadd.f32 %v634_v47, %v613_v21 }
 0x1aa   : > { %v798_v20 = vrot.slane %v1171_v4, %v797_v15  ;;  %v811_v21 = vrot.slane %v1171_v4, %v810_v13 }
 0x1ab   : > { %v689_v57 = vadd.f32 %v1276_v60, %v673_v51  ;;  %v690_v59 = vadd.f32 %v1276_v60, %v674_v53  ;;  %v671_v61 = vmul.f32 %v1312_v37, %v637_v52  ;;  %v672_v62 = vmul.f32 %v1318_v42, %v638_v54  ;;  %v687_v1 = vpop.permute.xlu0 %686 }
 0x1ad   : > { %v934_v56 = vmul.f32 -1.442695, %v689_v57  ;;  %v935_v32 = vmul.f32 -1.442695, %v690_v59  ;;  %v675_v63 = vadd.f32 %v671_v61, %v656_v36  ;;  %v676_v0 = vadd.f32 %v672_v62, %v657_v55 }
 0x1af   : > { %995 = vpow2.f32 %v934_v56  ;;  %v691_v2 = vadd.f32 %v687_v1, %v675_v63  ;;  %v692_v5 = vadd.f32 %v687_v1, %v676_v0 }
 0x1b0   : > { %997 = vpow2.f32 %v935_v32 }
 0x1b1   : > { %v936_v6 = vmul.f32 -1.442695, %v691_v2  ;;  %v937_v11 = vmul.f32 -1.442695, %v692_v5 }
 0x1b3   : > { %999 = vpow2.f32 %v936_v6 }
 0x1b4   : > { %1001 = vpow2.f32 %v937_v11 }
 0x1b9   : > { %v996_v12 = vpop.eup %995 }
 0x1ba   : > { %v998_v58 = vpop.eup %997  ;;  %v705_v60 = vadd.f32 1.0, %v996_v12 }
 0x1bb   : > { %v706_v9 = vadd.f32 1.0, %v998_v58 }
 0x1bc   : > { %1003 = vrcp.f32 %v705_v60 }
 0x1bd   : > { %v1000_v37 = vpop.eup %999  ;;  %1005 = vrcp.f32 %v706_v9 }
 0x1be   : > { %v1002_v42 = vpop.eup %1001  ;;  %v707_v10 = vadd.f32 1.0, %v1000_v37 }
 0x1bf   : > { %v708_v7 = vadd.f32 1.0, %v1002_v42 }
 0x1c0   : > { %1007 = vrcp.f32 %v707_v10 }
 0x1c1   : > { %1009 = vrcp.f32 %v708_v7 }
 0x1c6   : > { %v1004_v35 = vpop.eup %1003 }
 0x1c7   : > { %v1006_v27 = vpop.eup %1005  ;;  %v738_v39 = vmul.f32 %v1004_v35, %v733_v19  ;;  %v725_v40 = vmul.f32 %v1004_v35, %v720_v17  ;;  %v751_v41 = vmul.f32 %v1004_v35, %v746_v23  ;;  %v764_v43 = vmul.f32 %v1004_v35, %v759_v28 }
 0x1c8   : > { %v739_v26 = vmul.f32 %v1006_v27, %v737_v30  ;;  %v726_v44 = vmul.f32 %v1006_v27, %v724_v16  ;;  %v752_v45 = vmul.f32 %v1006_v27, %v750_v31  ;;  %v765_v46 = vmul.f32 %v1006_v27, %v763_v22 }
 0x1ca   : > { %v1008_v49 = vpop.eup %1007  ;;  %v740_v50 = vmax.f32 %v738_v39, %v739_v26  ;;  %v727_v47 = vmax.f32 %v725_v40, %v726_v44  ;;  %v753_v51 = vmax.f32 %v751_v41, %v752_v45  ;;  %v766_v53 = vmax.f32 %v764_v43, %v765_v46 }
 0x1cb   : > { %v1010_v52 = vpop.eup %1009  ;;  %v777_v54 = vmul.f32 %v1008_v49, %v772_v33  ;;  %v790_v36 = vmul.f32 %v1008_v49, %v785_v18  ;;  %v803_v4 = vmul.f32 %v1008_v49, %v798_v20  ;;  %v816_v55 = vmul.f32 %v1008_v49, %v811_v21 }
 0x1cc   : > { %741 = vmax.xlane.f32.xlu0 %v740_v50  ;;  %728 = vmax.xlane.f32.xlu1 %v727_v47  ;;  %v778_v57 = vmul.f32 %v1010_v52, %v776_v34  ;;  %v791_v59 = vmul.f32 %v1010_v52, %v789_v38  ;;  %v804_v61 = vmul.f32 %v1010_v52, %v802_v29 }
 0x1cd   : > { %v817_v62 = vmul.f32 %v1010_v52, %v815_v48 }
 0x1ce   : > { %v779_v56 = vmax.f32 %v777_v54, %v778_v57  ;;  %v792_v32 = vmax.f32 %v790_v36, %v791_v59  ;;  %v805_v3 = vmax.f32 %v803_v4, %v804_v61 }
 0x1cf   : > { %v818_v63 = vmax.f32 %v816_v55, %v817_v62 }
 0x1d0   : > { %754 = vmax.xlane.f32.xlu0 %v753_v51  ;;  %767 = vmax.xlane.f32.xlu1 %v766_v53 }
 0x1d4   : > { %780 = vmax.xlane.f32.xlu0 %v779_v56  ;;  %793 = vmax.xlane.f32.xlu1 %v792_v32 }
 0x1d8   : > { %806 = vmax.xlane.f32.xlu0 %v805_v3  ;;  %819 = vmax.xlane.f32.xlu1 %v818_v63 }
 0x259   : > { %v742_v0 = vpop.xlane.xlu0 %741  ;;  %v729_v1 = vpop.xlane.xlu1 %728 }
 0x25a   : > { %v821_v2 = vsel %vm480_vm1, %v729_v1, %v742_v0 }
 0x25d   : > { %v755_v5 = vpop.xlane.xlu0 %754  ;;  %v768_v6 = vpop.xlane.xlu1 %767 }
 0x25e   : > { %v823_v11 = vsel %vm822_vm9, %v821_v2, %v755_v5 }
 0x25f   : > { %v825_v12 = vsel %vm824_vm10, %v823_v11, %v768_v6 }
 0x261   : > { %v781_v58 = vpop.xlane.xlu0 %780  ;;  %v794_v60 = vpop.xlane.xlu1 %793 }
 0x262   : > { %v827_v9 = vsel %vm826_vm11, %v825_v12, %v781_v58 }
 0x263   : > { %v829_v37 = vsel %vm828_vm12, %v827_v9, %v794_v60 }
 0x265   : > { %v807_v42 = vpop.xlane.xlu0 %806  ;;  %v820_v10 = vpop.xlane.xlu1 %819 }
 0x266   : > { %v831_v7 = vsel %vm830_vm13, %v829_v37, %v807_v42 }
 0x267   : > { %v833_v8 = vsel %vm832_vm14, %v831_v7, %v820_v10 }
 0x268   : > { %834 = vst.msk [vmem:[%s190_s10] sm:$0xff] %vm216_vm0, %v833_v8 }
 0x269   : > { %1024 = shalt.err (!%p1021_p3)
}
 0x26a   : > { %s1025_s28 = scalar_lea.hbm %s1399_s14, 128  ;;  %s1029_s5 = scalar_lea.hbm %s1446_s4, 256 }
 0x26b   : > { %p1026_p4 = scmp.ne.s32.totalorder %s1399_s14, %s1025_s28  ;;  %p1030_p9 = scmp.lt.u32.totalorder %s1399_s14, %s1446_s4 }
 0x26c   : > { %p1031_p10 = scmp.lt.u32.totalorder %s1029_s5, %s1025_s28  ;;  %p1033_p12 = scmp.lt.u32.totalorder %s1025_s28, %s1399_s14 }
 0x26d   : > { %p1027_p7 = pnand %p1026_p4, %p1149_p5 }
 0x26e   : > { %p1032_p11 = por %p1031_p10, %p1030_p9 }
 0x26f   : > { %p1028_p8 = pneg %p1027_p7 }
 0x270   : > { %p1034_p13 = por %p1033_p12, %p1032_p11 }
 0x272   : > { %p1035_p0 = pnand %p1034_p13, %p1028_p8 }
 0x274   : > { %1038 = shalt.err (!%p1035_p0)
}
 0x275   : > { %945 = dma.vmem_to_hbm [thread:$0]  (%p1149_p5), %s1401_s11, 128, %s1399_s14, %s836_s19  }
 0x276 PF: > { %p951_p1 = scmp.ge.s32.totalorder %s1073_s18, 2  ;;  %s861_s8 = sand.u32 1, %s1061_s15  }
 0x277   : > { %s862_s9 = scalar_lea.sflag [#allocation3], %s861_s8 }
 0x278   : > { %p948_p2 = pnand %p951_p1, %p1153_p6 }
 0x27a   : > { %1056 = dma.done.wait (!%p948_p2), %s862_s9, 128  }
 0x27b   : > { %1058 = vsyncadd (!%p948_p2), %s862_s9, 4294967168  ;;  %p14_p3 = scmp.ge.s32.totalorder %s1136_s21, 4   ;;  %s1449_s15 = smov %s1065_s16 }
 0x27c   : > { %s1450_s16 = smov %s1069_s17  ;;  %s1451_s17 = smov %s1147_s24 }
 0x27d   : > { %s1452_s18 = smov %s1136_s21  ;;  %16 = sbr.rel (!%p14_p3) target bundleno = 3 (0x3), region = 72 }
 0x284   :  { %867 = vsyncpa [#allocation3], 1 }
 0x285   :  { %869 = vsyncpa [#allocation3 + $0x1], 1 }

</bundles_post_ra>
